<compile_context>
chip_gen: v5e
topology: v5e:2x2
jax: 0.10.0
libtpu: 0.0.40
codegen_flags: <defaults>
</compile_context>

<pallas_src>
import functools

import jax
import jax.numpy as jnp
from jax import lax
from jax.experimental import pallas as pl
from jax.experimental.pallas import tpu as pltpu


def _conv3x3_stage(act, w_ref, b_ref, col_masks, H, W):
    """3x3 'same' conv + folded-BN bias + ReLU on a channel-major activation.

    act       : (C, H*W)     bf16 value, spatial flattened on the lane axis
    w_ref     : (Cout, 9*C)  bf16 im2col weights (BN scale folded), cols = (kh, kw, c)
    b_ref     : (Cout, 1)    f32 folded BN bias (includes conv bias)
    col_masks : {-1: m, +1: m} (1, H*W) bool column-validity masks
    returns   : (Cout, H*W)  f32
    """
    C, HW = act.shape
    # Zero halo built as a VALUE on the lane axis (no scratch, no memset stores).
    # ext[:, (W+1) + k] == act[:, k]; everything outside that window is zero.
    zpad = jnp.zeros((C, W + 1), act.dtype)
    ext = jnp.concatenate([zpad, act, zpad], axis=1)            # (C, H*W + 2W + 2)

    taps = []
    for dh in (-1, 0, 1):            # kh - 1
        for dw in (-1, 0, 1):        # kw - 1
            start = (W + 1) + dh * W + dw                       # static, always >= 0
            t = ext[:, start:start + HW]                        # (C, H*W) lane slice
            if dw != 0:                                         # zero the wrapped column edge
                t = jnp.where(col_masks[dw], t, jnp.zeros_like(t))
            taps.append(t)
    patch = jnp.concatenate(taps, axis=0)                       # (9*C, H*W) bf16

    # One deep MXU matmul per stage: K = 9*C, N = H*W (lane-dense result).
    acc = jnp.dot(w_ref[...], patch, preferred_element_type=jnp.float32)   # (Cout, H*W) f32
    return jnp.maximum(acc + b_ref[...], 0.0)                   # f32 epilogue (scale pre-folded)


def _double_conv_kernel(x_ref, w1_ref, b1_ref, w2_ref, b2_ref, o_ref, *, H, W):
    """Fused (conv3x3 => BN => ReLU) * 2 for one batch element (channel-major).

    x_ref : (1, Cin, H*W) f32      o_ref : (1, Cout, H*W) f32
    """
    HW = H * W
    # Column-validity masks, computed once and shared by both stages.
    col = lax.broadcasted_iota(jnp.int32, (1, HW), 1) % W
    col_masks = {-1: col >= 1, 1: col <= W - 2}

    act1 = x_ref[0].astype(jnp.bfloat16)                        # cast once at entry
    y1 = _conv3x3_stage(act1, w1_ref, b1_ref, col_masks, H, W)  # (Cmid, H*W) f32

    act2 = y1.astype(jnp.bfloat16)                              # stage-2 input never leaves VMEM
    y2 = _conv3x3_stage(act2, w2_ref, b2_ref, col_masks, H, W)  # (Cout, H*W) f32

    o_ref[0] = y2.astype(o_ref.dtype)                           # lane-dense (Cout, H*W) store


@jax.jit
def double_conv_forward(x_nchw, w1_mat, bias1, w2_mat, bias2):
    """NCHW in / NCHW out. The kernel works on channel-major (C, H*W) slabs, so
    only free reshapes (no transposes / extra HBM passes) surround the call."""
    N, cin, H, W = x_nchw.shape
    cmid = w1_mat.shape[0]
    cout = w2_mat.shape[0]
    HW = H * W
    x = x_nchw.reshape(N, cin, HW)                              # free reshape

    # Deliberate VMEM budget with headroom for temporaries, capped well below
    # v7x's 64 MiB physical VMEM (v5e/v6e have 128 MiB).
    est = (2 * (cin + cout) * HW * 4                            # 2x-buffered I/O blocks (f32)
           + (cmid * 9 * cin + cout * 9 * cmid) * 2             # bf16 weights
           + (cmid + cout) * 4                                  # biases
           + (9 * cin + 9 * cmid + cin + cmid) * (HW + 2 * W + 2) * 2   # bf16 taps / ext
           + (cmid + cout) * HW * 4)                            # f32 stage results
    vmem_limit = int(min(max(8 * est, 16 << 20), 48 << 20))

    def const_spec(shape):
        # Per-call constants: constant index_map, no need for double buffering.
        return pl.BlockSpec(shape, lambda n: (0,) * len(shape),
                            pipeline_mode=pl.Buffered(1))

    out = pl.pallas_call(
        functools.partial(_double_conv_kernel, H=H, W=W),
        out_shape=jax.ShapeDtypeStruct((N, cout, HW), jnp.float32),
        grid=(N,),
        in_specs=[
            pl.BlockSpec((1, cin, HW), lambda n: (n, 0, 0)),    # lane-dense input block
            const_spec((cmid, 9 * cin)),                        # stage-1 weights (bf16, BN folded)
            const_spec((cmid, 1)),                              # stage-1 folded bias
            const_spec((cout, 9 * cmid)),                       # stage-2 weights (bf16, BN folded)
            const_spec((cout, 1)),                              # stage-2 folded bias
        ],
        out_specs=pl.BlockSpec((1, cout, HW), lambda n: (n, 0, 0)),   # lane-dense output
        compiler_params=pltpu.CompilerParams(
            dimension_semantics=("parallel",),
            vmem_limit_bytes=vmem_limit),
    )(x, w1_mat, bias1, w2_mat, bias2)

    return out.reshape(N, cout, H, W)                           # free reshape back to NCHW


def _fold_bn_into_weights(w_oihw, conv_bias, gamma, beta, mean, var, eps=1e-5):
    """Fold inference-mode BN into the conv: bf16 im2col weights with the BN scale
    pre-multiplied (column order (kh, kw, cin) matches the kernel's tap order) and
    an f32 per-channel bias."""
    cout = w_oihw.shape[0]
    scale = gamma / jnp.sqrt(var + eps)                                   # (Cout,)
    w_mat = jnp.transpose(w_oihw, (0, 2, 3, 1)).reshape(cout, -1)         # (Cout, 9*Cin)
    w_mat = (w_mat * scale[:, None]).astype(jnp.bfloat16)
    bias = ((conv_bias - mean) * scale + beta).astype(jnp.float32).reshape(cout, 1)
    return w_mat, bias


def init_double_conv_params(key, in_channels, out_channels):
    """Deterministic synthetic parameters matching the PyTorch module's shapes."""
    ks = jax.random.split(key, 8)
    # Conv2d #1 + BatchNorm2d #1
    w1 = jax.random.normal(ks[0], (out_channels, in_channels, 3, 3), jnp.float32) * 0.1
    b1 = jax.random.normal(ks[1], (out_channels,), jnp.float32) * 0.1
    g1 = 1.0 + 0.1 * jax.random.normal(ks[2], (out_channels,), jnp.float32)
    be1 = 0.1 * jax.random.normal(ks[3], (out_channels,), jnp.float32)
    m1 = 0.05 * jax.random.normal(ks[4], (out_channels,), jnp.float32)
    v1 = 1.0 + 0.1 * jnp.abs(jax.random.normal(ks[5], (out_channels,), jnp.float32))
    # Conv2d #2 + BatchNorm2d #2
    w2 = jax.random.normal(ks[6], (out_channels, out_channels, 3, 3), jnp.float32) * 0.1
    b2 = jax.random.normal(ks[7], (out_channels,), jnp.float32) * 0.1
    g2 = jnp.linspace(0.9, 1.1, out_channels, dtype=jnp.float32)
    be2 = jnp.linspace(-0.05, 0.05, out_channels, dtype=jnp.float32)
    m2 = jnp.linspace(-0.02, 0.02, out_channels, dtype=jnp.float32)
    v2 = jnp.linspace(0.95, 1.05, out_channels, dtype=jnp.float32)

    w1_mat, bias1 = _fold_bn_into_weights(w1, b1, g1, be1, m1, v1)
    w2_mat, bias2 = _fold_bn_into_weights(w2, b2, g2, be2, m2, v2)
    return dict(w1_mat=w1_mat, bias1=bias1, w2_mat=w2_mat, bias2=bias2,
                raw=dict(w1=w1, b1=b1, g1=g1, be1=be1, m1=m1, v1=v1,
                         w2=w2, b2=b2, g2=g2, be2=be2, m2=m2, v2=v2))


def _reference_double_conv(x_nchw, raw, eps=1e-5):
    def stage(x, w, b, g, be, m, v):
        y = lax.conv_general_dilated(
            x, w, window_strides=(1, 1), padding=((1, 1), (1, 1)),
            dimension_numbers=("NCHW", "OIHW", "NCHW"))
        y = y + b[None, :, None, None]
        y = (y - m[None, :, None, None]) / jnp.sqrt(v[None, :, None, None] + eps)
        y = y * g[None, :, None, None] + be[None, :, None, None]
        return jnp.maximum(y, 0.0)

    y = stage(x_nchw, raw["w1"], raw["b1"], raw["g1"], raw["be1"], raw["m1"], raw["v1"])
    y = stage(y, raw["w2"], raw["b2"], raw["g2"], raw["be2"], raw["m2"], raw["v2"])
    return y


if __name__ == "__main__":
    key = jax.random.PRNGKey(0)
    k_x, k_p = jax.random.split(key)

    N, C_in, C_out, H, W = 2, 4, 8, 16, 16
    x = jax.random.normal(k_x, (N, C_in, H, W), jnp.float32)
    params = init_double_conv_params(k_p, C_in, C_out)

    out = double_conv_forward(x, params["w1_mat"], params["bias1"],
                              params["w2_mat"], params["bias2"])
    out = jax.block_until_ready(out)

    ref = _reference_double_conv(x, params["raw"])
    assert out.shape == (N, C_out, H, W), out.shape
    # bf16 MXU operands (f32 accumulate) loosen the tolerance vs. the f32 reference.
    err = float(jnp.max(jnp.abs(out - ref)))
    assert jnp.allclose(out, ref, atol=5e-2, rtol=5e-2), err

    print("KERNEL_OK")
</pallas_src>

<mosaic_0001>
module attributes {stable_mosaic.version = 11 : i64} {
  func.func @_double_conv_kernel(%arg0: i32, %arg1: memref<1x4x256xf32, #tpu.memory_space<vmem>>, %arg2: memref<8x36xbf16, #tpu.memory_space<vmem>>, %arg3: memref<8x1xf32, #tpu.memory_space<vmem>>, %arg4: memref<8x72xbf16, #tpu.memory_space<vmem>>, %arg5: memref<8x1xf32, #tpu.memory_space<vmem>>, %arg6: memref<1x8x256xf32, #tpu.memory_space<vmem>>) attributes {dimension_semantics = [#tpu.dimension_semantics<parallel>], iteration_bounds = array<i64: 2>, scalar_prefetch = 0 : i64, scratch_operands = 0 : i64, tpu.core_type = #tpu.core_type<tc>, window_params = [{transform_indices = @transform_0, window_bounds = array<i64: 1, 4, 256>}, {pipeline_mode = #tpu.pipeline_mode<synchronous>, transform_indices = @transform_1, window_bounds = array<i64: 8, 36>}, {pipeline_mode = #tpu.pipeline_mode<synchronous>, transform_indices = @transform_2, window_bounds = array<i64: 8, 1>}, {pipeline_mode = #tpu.pipeline_mode<synchronous>, transform_indices = @transform_3, window_bounds = array<i64: 8, 72>}, {pipeline_mode = #tpu.pipeline_mode<synchronous>, transform_indices = @transform_4, window_bounds = array<i64: 8, 1>}, {transform_indices = @transform_5, window_bounds = array<i64: 1, 8, 256>}]} {
    %0 = tpu.iota {dimensions = array<i32: 1>} : vector<1x256xi32>
    %c16_i32 = arith.constant 16 : i32
    %c0_i32 = arith.constant 0 : i32
    %1 = arith.cmpi eq, %c16_i32, %c0_i32 : i32
    %c1_i32 = arith.constant 1 : i32
    %2 = arith.select %1, %c1_i32, %c16_i32 : i32
    %3 = vector.broadcast %2 : i32 to vector<1x256xi32>
    %4 = arith.remsi %0, %3 : vector<1x256xi32>
    %c0_i32_0 = arith.constant 0 : i32
    %5 = vector.broadcast %c0_i32_0 : i32 to vector<1x256xi32>
    %6 = arith.cmpi ne, %4, %5 : vector<1x256xi32>
    %c0_i32_1 = arith.constant 0 : i32
    %7 = vector.broadcast %c0_i32_1 : i32 to vector<1x256xi32>
    %8 = arith.cmpi slt, %4, %7 : vector<1x256xi32>
    %c0_i32_2 = arith.constant 0 : i32
    %9 = arith.cmpi slt, %2, %c0_i32_2 : i32
    %10 = vector.broadcast %9 : i1 to vector<1x256xi1>
    %11 = vector.broadcast %10 : vector<1x256xi1> to vector<1x256xi1>
    %12 = arith.xori %8, %11 : vector<1x256xi1>
    %13 = arith.andi %12, %6 : vector<1x256xi1>
    %14 = vector.broadcast %2 : i32 to vector<1x256xi32>
    %15 = arith.addi %4, %14 : vector<1x256xi32>
    %16 = arith.select %13, %15, %4 : vector<1x256xi1>, vector<1x256xi32>
    %c1_i32_3 = arith.constant 1 : i32
    %17 = vector.broadcast %c1_i32_3 : i32 to vector<1x256xi32>
    %18 = arith.cmpi sge, %16, %17 : vector<1x256xi32>
    %c14_i32 = arith.constant 14 : i32
    %19 = vector.broadcast %c14_i32 : i32 to vector<1x256xi32>
    %20 = arith.cmpi sle, %16, %19 : vector<1x256xi32>
    %c0 = arith.constant 0 : index
    %c0_4 = arith.constant 0 : index
    %c0_5 = arith.constant 0 : index
    %21 = vector.load %arg1[%c0, %c0_4, %c0_5] : memref<1x4x256xf32, #tpu.memory_space<vmem>>, vector<1x4x256xf32>
    %22 = vector.shape_cast %21 : vector<1x4x256xf32> to vector<4x256xf32>
    %23 = arith.truncf %22 : vector<4x256xf32> to vector<4x256xbf16>
    %cst = arith.constant 0.000000e+00 : bf16
    %24 = vector.broadcast %cst : bf16 to vector<4x17xbf16>
    %25 = tpu.concatenate %24, %23, %24 in 1 : vector<4x17xbf16>, vector<4x256xbf16>, vector<4x17xbf16> -> vector<4x290xbf16>
    %26 = vector.extract_strided_slice %25 {offsets = [0, 0], sizes = [4, 256], strides = [1, 1]} : vector<4x290xbf16> to vector<4x256xbf16>
    %cst_6 = arith.constant 0.000000e+00 : bf16
    %27 = vector.broadcast %cst_6 : bf16 to vector<4x256xbf16>
    %28 = vector.shape_cast %18 : vector<1x256xi1> to vector<1x256xi1>
    %29 = vector.broadcast %28 : vector<1x256xi1> to vector<4x256xi1>
    %30 = arith.select %29, %26, %27 : vector<4x256xi1>, vector<4x256xbf16>
    %31 = vector.extract_strided_slice %25 {offsets = [0, 1], sizes = [4, 256], strides = [1, 1]} : vector<4x290xbf16> to vector<4x256xbf16>
    %32 = vector.extract_strided_slice %25 {offsets = [0, 2], sizes = [4, 256], strides = [1, 1]} : vector<4x290xbf16> to vector<4x256xbf16>
    %cst_7 = arith.constant 0.000000e+00 : bf16
    %33 = vector.broadcast %cst_7 : bf16 to vector<4x256xbf16>
    %34 = vector.shape_cast %20 : vector<1x256xi1> to vector<1x256xi1>
    %35 = vector.broadcast %34 : vector<1x256xi1> to vector<4x256xi1>
    %36 = arith.select %35, %32, %33 : vector<4x256xi1>, vector<4x256xbf16>
    %37 = vector.extract_strided_slice %25 {offsets = [0, 16], sizes = [4, 256], strides = [1, 1]} : vector<4x290xbf16> to vector<4x256xbf16>
    %cst_8 = arith.constant 0.000000e+00 : bf16
    %38 = vector.broadcast %cst_8 : bf16 to vector<4x256xbf16>
    %39 = vector.shape_cast %18 : vector<1x256xi1> to vector<1x256xi1>
    %40 = vector.broadcast %39 : vector<1x256xi1> to vector<4x256xi1>
    %41 = arith.select %40, %37, %38 : vector<4x256xi1>, vector<4x256xbf16>
    %42 = vector.extract_strided_slice %25 {offsets = [0, 17], sizes = [4, 256], strides = [1, 1]} : vector<4x290xbf16> to vector<4x256xbf16>
    %43 = vector.extract_strided_slice %25 {offsets = [0, 18], sizes = [4, 256], strides = [1, 1]} : vector<4x290xbf16> to vector<4x256xbf16>
    %cst_9 = arith.constant 0.000000e+00 : bf16
    %44 = vector.broadcast %cst_9 : bf16 to vector<4x256xbf16>
    %45 = vector.shape_cast %20 : vector<1x256xi1> to vector<1x256xi1>
    %46 = vector.broadcast %45 : vector<1x256xi1> to vector<4x256xi1>
    %47 = arith.select %46, %43, %44 : vector<4x256xi1>, vector<4x256xbf16>
    %48 = vector.extract_strided_slice %25 {offsets = [0, 32], sizes = [4, 256], strides = [1, 1]} : vector<4x290xbf16> to vector<4x256xbf16>
    %cst_10 = arith.constant 0.000000e+00 : bf16
    %49 = vector.broadcast %cst_10 : bf16 to vector<4x256xbf16>
    %50 = vector.shape_cast %18 : vector<1x256xi1> to vector<1x256xi1>
    %51 = vector.broadcast %50 : vector<1x256xi1> to vector<4x256xi1>
    %52 = arith.select %51, %48, %49 : vector<4x256xi1>, vector<4x256xbf16>
    %53 = vector.extract_strided_slice %25 {offsets = [0, 33], sizes = [4, 256], strides = [1, 1]} : vector<4x290xbf16> to vector<4x256xbf16>
    %54 = vector.extract_strided_slice %25 {offsets = [0, 34], sizes = [4, 256], strides = [1, 1]} : vector<4x290xbf16> to vector<4x256xbf16>
    %cst_11 = arith.constant 0.000000e+00 : bf16
    %55 = vector.broadcast %cst_11 : bf16 to vector<4x256xbf16>
    %56 = vector.shape_cast %20 : vector<1x256xi1> to vector<1x256xi1>
    %57 = vector.broadcast %56 : vector<1x256xi1> to vector<4x256xi1>
    %58 = arith.select %57, %54, %55 : vector<4x256xi1>, vector<4x256xbf16>
    %59 = tpu.concatenate %30, %31, %36, %41, %42, %47, %52, %53, %58 in 0 : vector<4x256xbf16>, vector<4x256xbf16>, vector<4x256xbf16>, vector<4x256xbf16>, vector<4x256xbf16>, vector<4x256xbf16>, vector<4x256xbf16>, vector<4x256xbf16>, vector<4x256xbf16> -> vector<36x256xbf16>
    %c0_12 = arith.constant 0 : index
    %c0_13 = arith.constant 0 : index
    %60 = vector.load %arg2[%c0_12, %c0_13] : memref<8x36xbf16, #tpu.memory_space<vmem>>, vector<8x36xbf16>
    %cst_14 = arith.constant dense<0.000000e+00> : vector<8x256xf32>
    %61 = tpu.matmul %60, %59, %cst_14 {dimension_numbers = #tpu.dot_dimension_numbers<[1], [0], [0], [1], [0, 0, 1, 1], [], []>} : vector<8x36xbf16>, vector<36x256xbf16>, vector<8x256xf32> -> vector<8x256xf32>
    %c0_15 = arith.constant 0 : index
    %c0_16 = arith.constant 0 : index
    %62 = vector.load %arg3[%c0_15, %c0_16] : memref<8x1xf32, #tpu.memory_space<vmem>>, vector<8x1xf32>
    %63 = vector.broadcast %62 : vector<8x1xf32> to vector<8x256xf32>
    %64 = arith.addf %61, %63 : vector<8x256xf32>
    %cst_17 = arith.constant 0.000000e+00 : f32
    %65 = vector.broadcast %cst_17 : f32 to vector<8x256xf32>
    %66 = arith.maximumf %64, %65 : vector<8x256xf32>
    %67 = arith.truncf %66 : vector<8x256xf32> to vector<8x256xbf16>
    %cst_18 = arith.constant 0.000000e+00 : bf16
    %68 = vector.broadcast %cst_18 : bf16 to vector<8x17xbf16>
    %69 = tpu.concatenate %68, %67, %68 in 1 : vector<8x17xbf16>, vector<8x256xbf16>, vector<8x17xbf16> -> vector<8x290xbf16>
    %70 = vector.extract_strided_slice %69 {offsets = [0, 0], sizes = [8, 256], strides = [1, 1]} : vector<8x290xbf16> to vector<8x256xbf16>
    %cst_19 = arith.constant 0.000000e+00 : bf16
    %71 = vector.broadcast %cst_19 : bf16 to vector<8x256xbf16>
    %72 = vector.shape_cast %18 : vector<1x256xi1> to vector<1x256xi1>
    %73 = vector.broadcast %72 : vector<1x256xi1> to vector<8x256xi1>
    %74 = arith.select %73, %70, %71 : vector<8x256xi1>, vector<8x256xbf16>
    %75 = vector.extract_strided_slice %69 {offsets = [0, 1], sizes = [8, 256], strides = [1, 1]} : vector<8x290xbf16> to vector<8x256xbf16>
    %76 = vector.extract_strided_slice %69 {offsets = [0, 2], sizes = [8, 256], strides = [1, 1]} : vector<8x290xbf16> to vector<8x256xbf16>
    %cst_20 = arith.constant 0.000000e+00 : bf16
    %77 = vector.broadcast %cst_20 : bf16 to vector<8x256xbf16>
    %78 = vector.shape_cast %20 : vector<1x256xi1> to vector<1x256xi1>
    %79 = vector.broadcast %78 : vector<1x256xi1> to vector<8x256xi1>
    %80 = arith.select %79, %76, %77 : vector<8x256xi1>, vector<8x256xbf16>
    %81 = vector.extract_strided_slice %69 {offsets = [0, 16], sizes = [8, 256], strides = [1, 1]} : vector<8x290xbf16> to vector<8x256xbf16>
    %cst_21 = arith.constant 0.000000e+00 : bf16
    %82 = vector.broadcast %cst_21 : bf16 to vector<8x256xbf16>
    %83 = vector.shape_cast %18 : vector<1x256xi1> to vector<1x256xi1>
    %84 = vector.broadcast %83 : vector<1x256xi1> to vector<8x256xi1>
    %85 = arith.select %84, %81, %82 : vector<8x256xi1>, vector<8x256xbf16>
    %86 = vector.extract_strided_slice %69 {offsets = [0, 17], sizes = [8, 256], strides = [1, 1]} : vector<8x290xbf16> to vector<8x256xbf16>
    %87 = vector.extract_strided_slice %69 {offsets = [0, 18], sizes = [8, 256], strides = [1, 1]} : vector<8x290xbf16> to vector<8x256xbf16>
    %cst_22 = arith.constant 0.000000e+00 : bf16
    %88 = vector.broadcast %cst_22 : bf16 to vector<8x256xbf16>
    %89 = vector.shape_cast %20 : vector<1x256xi1> to vector<1x256xi1>
    %90 = vector.broadcast %89 : vector<1x256xi1> to vector<8x256xi1>
    %91 = arith.select %90, %87, %88 : vector<8x256xi1>, vector<8x256xbf16>
    %92 = vector.extract_strided_slice %69 {offsets = [0, 32], sizes = [8, 256], strides = [1, 1]} : vector<8x290xbf16> to vector<8x256xbf16>
    %cst_23 = arith.constant 0.000000e+00 : bf16
    %93 = vector.broadcast %cst_23 : bf16 to vector<8x256xbf16>
    %94 = vector.shape_cast %18 : vector<1x256xi1> to vector<1x256xi1>
    %95 = vector.broadcast %94 : vector<1x256xi1> to vector<8x256xi1>
    %96 = arith.select %95, %92, %93 : vector<8x256xi1>, vector<8x256xbf16>
    %97 = vector.extract_strided_slice %69 {offsets = [0, 33], sizes = [8, 256], strides = [1, 1]} : vector<8x290xbf16> to vector<8x256xbf16>
    %98 = vector.extract_strided_slice %69 {offsets = [0, 34], sizes = [8, 256], strides = [1, 1]} : vector<8x290xbf16> to vector<8x256xbf16>
    %cst_24 = arith.constant 0.000000e+00 : bf16
    %99 = vector.broadcast %cst_24 : bf16 to vector<8x256xbf16>
    %100 = vector.shape_cast %20 : vector<1x256xi1> to vector<1x256xi1>
    %101 = vector.broadcast %100 : vector<1x256xi1> to vector<8x256xi1>
    %102 = arith.select %101, %98, %99 : vector<8x256xi1>, vector<8x256xbf16>
    %103 = tpu.concatenate %74, %75, %80, %85, %86, %91, %96, %97, %102 in 0 : vector<8x256xbf16>, vector<8x256xbf16>, vector<8x256xbf16>, vector<8x256xbf16>, vector<8x256xbf16>, vector<8x256xbf16>, vector<8x256xbf16>, vector<8x256xbf16>, vector<8x256xbf16> -> vector<72x256xbf16>
    %c0_25 = arith.constant 0 : index
    %c0_26 = arith.constant 0 : index
    %104 = vector.load %arg4[%c0_25, %c0_26] : memref<8x72xbf16, #tpu.memory_space<vmem>>, vector<8x72xbf16>
    %cst_27 = arith.constant dense<0.000000e+00> : vector<8x256xf32>
    %105 = tpu.matmul %104, %103, %cst_27 {dimension_numbers = #tpu.dot_dimension_numbers<[1], [0], [0], [1], [0, 0, 1, 1], [], []>} : vector<8x72xbf16>, vector<72x256xbf16>, vector<8x256xf32> -> vector<8x256xf32>
    %c0_28 = arith.constant 0 : index
    %c0_29 = arith.constant 0 : index
    %106 = vector.load %arg5[%c0_28, %c0_29] : memref<8x1xf32, #tpu.memory_space<vmem>>, vector<8x1xf32>
    %107 = vector.broadcast %106 : vector<8x1xf32> to vector<8x256xf32>
    %108 = arith.addf %105, %107 : vector<8x256xf32>
    %cst_30 = arith.constant 0.000000e+00 : f32
    %109 = vector.broadcast %cst_30 : f32 to vector<8x256xf32>
    %110 = arith.maximumf %108, %109 : vector<8x256xf32>
    %c0_31 = arith.constant 0 : index
    %c0_32 = arith.constant 0 : index
    %c0_33 = arith.constant 0 : index
    %111 = vector.load %arg6[%c0_31, %c0_32, %c0_33] : memref<1x8x256xf32, #tpu.memory_space<vmem>>, vector<1x8x256xf32>
    %112 = vector.shape_cast %111 : vector<1x8x256xf32> to vector<8x256xf32>
    %113 = vector.shape_cast %110 : vector<8x256xf32> to vector<1x8x256xf32>
    tpu.vector_store %arg6[%c0_31, %c0_32, %c0_33], %113 {strides = array<i32>} : memref<1x8x256xf32, #tpu.memory_space<vmem>>, vector<1x8x256xf32>,
    return
  }
  func.func @transform_0(%arg0: i32) -> (i32, i32, i32) {
    %c0_i32 = arith.constant 0 : i32
    %c0_i32_0 = arith.constant 0 : i32
    %c0_i32_1 = arith.constant 0 : i32
    return %arg0, %c0_i32, %c0_i32_0 : i32, i32, i32
  }
  func.func @transform_1(%arg0: i32) -> (i32, i32) {
    %c0_i32 = arith.constant 0 : i32
    %c0_i32_0 = arith.constant 0 : i32
    %c0_i32_1 = arith.constant 0 : i32
    return %c0_i32, %c0_i32_0 : i32, i32
  }
  func.func @transform_2(%arg0: i32) -> (i32, i32) {
    %c0_i32 = arith.constant 0 : i32
    %c0_i32_0 = arith.constant 0 : i32
    %c0_i32_1 = arith.constant 0 : i32
    return %c0_i32, %c0_i32_0 : i32, i32
  }
  func.func @transform_3(%arg0: i32) -> (i32, i32) {
    %c0_i32 = arith.constant 0 : i32
    %c0_i32_0 = arith.constant 0 : i32
    %c0_i32_1 = arith.constant 0 : i32
    return %c0_i32, %c0_i32_0 : i32, i32
  }
  func.func @transform_4(%arg0: i32) -> (i32, i32) {
    %c0_i32 = arith.constant 0 : i32
    %c0_i32_0 = arith.constant 0 : i32
    %c0_i32_1 = arith.constant 0 : i32
    return %c0_i32, %c0_i32_0 : i32, i32
  }
  func.func @transform_5(%arg0: i32) -> (i32, i32, i32) {
    %c0_i32 = arith.constant 0 : i32
    %c0_i32_0 = arith.constant 0 : i32
    %c0_i32_1 = arith.constant 0 : i32
    return %arg0, %c0_i32, %c0_i32_0 : i32, i32, i32
  }
}

</mosaic_0001>

<bundles_post_ra>
// kernel: double_conv_forward.1
= control target key start
LH: loop header
LB: loop body
LE: loop exit
PB: predicated region body
PF: predicated region fallthrough
CT: control target
= control target key end

     0   :  { %s1010_s18 = smov 0   ;;  %s1623_s0 = inlined_call_operand.vmem [shape: f32[2,4,256], index: 0, kind: input, shape index: {}]   ;;  %s1624_s1 = inlined_call_operand.vmem [shape: bf16[8,36], index: 1, kind: input, shape index: {}]   ;;  %s1625_s2 = inlined_call_operand.vmem [shape: f32[8,1], index: 2, kind: input, shape index: {}]   ;;  %s1626_s3 = inlined_call_operand.vmem [shape: bf16[8,72], index: 3, kind: input, shape index: {}]   ;;  %s1627_s4 = inlined_call_operand.vmem [shape: f32[8,1], index: 4, kind: input, shape index: {}]   ;;  %s1628_s5 = inlined_call_operand.vmem [shape: f32[2,8,256], index: 5, kind: output, shape index: {}]  }
   0x1 LB: > { %s915_s19 = sadd.s32 4294967295, %s963_s18   ;;  %p919_p0 = scmp.ge.s32.totalorder %s963_s18, 1  ;;  %s963_s18 = sphi %s1010_s18, %s15_s18  }
   0x2   : > { %p187_p1 = scmp.lt.s32.totalorder %s963_s18, 3 }
   0x4   : > { %p188_p2 = pnand %p919_p0, %p187_p1 }
   0x5   : > { %p215_p3 = scmp.lt.s32.totalorder (!%p188_p2), %s915_s19, 1  ;;  %s966_s24 = smov (!%p188_p2), 34  }
   0x6   : > { %191 = sbr.rel (%p188_p2) target bundleno = 901 (0x385), region = 40  ;;  %s967_s25 = smov (!%p188_p2), 18  }
   0x7   : > { %s968_s26 = smov (!%p188_p2), 32   ;;  %s969_s27 = smov (!%p188_p2), 17  }
   0x8   : > { %s970_s28 = smov (!%p188_p2), 2   ;;  %s971_s29 = smov (!%p188_p2), 16  }
   0x9   : > { %s972_s30 = smov (!%p188_p2), 111   ;;  %s973_s6 = smov (!%p188_p2), 94  }
   0xa   : > { %s974_s7 = smov (!%p188_p2), 95   ;;  %s975_s8 = smov (!%p188_p2), 127  }
   0xb   : > { %v228_v0 = vlaneseq  ;;  %v965_v1 = vmov 0   ;;  %s1813_s19 = smov (!%p215_p3, %s915_s19), 1  ;;  %vm443_vm12 = vcmask 277504   ;;  %vm1632_vm13 = vcmask 138240   ;;  %s976_s9 = smov 110  }
   0xc   : > { %955 = vset.pattern.permute.xlu0 %v965_v1  ;;  %956 = vset.pattern.permute.xlu1 %v965_v1  ;;  %s930_s20 = sshll.u32 %s1813_s19, 3  ;;  %v1026_v20 = vunpack.c.l.b16 %v965_v1  ;;  %v1028_v22 = vunpack.c.h.b16 %v965_v1  ;;  %v1685_v46 = vmov 0  ;;  %v1687_v47 = vmov 0  ;;  %s977_s10 = smov 96  }
   0xd   : > { %v229_v2 = vand.u32 127, %v228_v0  ;;  %s219_s23 = scalar_lea.vmem %s1623_s0, %s930_s20  ;;  %v1689_v48 = vmov 0  ;;  %v1693_v50 = vmov 0  ;;  %v1695_v51 = vmov 0  ;;  %s978_s11 = smov 126  }
   0xe   : > { %v259_v6 = vld [vmem:[%s219_s23] sm:$0xff]  ;;  %s979_s12 = smov 112   ;;  %s931_s23 = sshll.u32 %s1813_s19, 4 }
   0xf   : > { %v230_v3 = vadd.s32 128, %v229_v2  ;;  %v235_v4 = vand.u32 15, %v229_v2  ;;  %261 = vst [vmem:[#allocation1] ss:$2 sm:$0xff] %v259_v6 }
  0x11   : > { %v242_v5 = vand.u32 15, %v230_v3  ;;  %vm257_vm0 = vcmp.le.s32.totalorder %v235_v4, 14  ;;  %vm255_vm1 = vcmp.ge.s32.totalorder %v235_v4, 1  ;;  %v1697_v3 = vmov 0 }
  0x12   : > { %v1699_v4 = vmov 0 }
  0x13   : > { %vm258_vm2 = vcmp.le.s32.totalorder %v242_v5, 14  ;;  %vm256_vm3 = vcmp.ge.s32.totalorder %v242_v5, 1 }
  0x14   : > { %vm315_vm4 = vmpackc.low %vm258_vm2, %vm257_vm0 }
  0x15   : > { %v316_v7 = vsel %vm315_vm4, 65537, %v965_v1  ;;  %vm291_vm5 = vmpackc.low %vm256_vm3, %vm255_vm1 }
  0x16   : > { %v317_v8 = vperm.slane %v316_v7, 0  ;;  %v292_v9 = vsel %vm291_vm5, 65537, %v965_v1  ;;  %v262_v11 = vld.sshfl [vmem:[#allocation1] sm:$0xff pattern:$0x75316420]  ;;  %v318_v13 = vperm.slane %v316_v7, 4 }
  0x17   : > { %v293_v10 = vperm.slane %v292_v9, 0  ;;  %v263_v12 = vld.sshfl [vmem:[#allocation1 + $0x8] sm:$0xff pattern:$0x75316420]  ;;  %v294_v15 = vperm.slane %v292_v9, 4  ;;  %v1703_v9 = vmov 0 }
  0x18   : > { %439 = vrot.lane.b32.xlu1 %v317_v8, %s966_s24  ;;  %379 = vrot.lane.b32.xlu0 %v317_v8, %s967_s25  ;;  %v266_v14 = vpack.c.bf16 %v263_v12, %v262_v11 }
  0x19   : > { %409 = vrot.lane.b32.xlu2 %v293_v10, %s968_s26  ;;  %v302_v21 = vunpack.c.l.b16 %v294_v15  ;;  %v303_v23 = vunpack.c.h.b16 %v294_v15  ;;  %v295_v24 = vunpack.c.l.b16 %v293_v10  ;;  %v296_v26 = vunpack.c.h.b16 %v293_v10 }
  0x1a   : > { %v269_v16 = vunpack.c.h.b16 %v266_v14  ;;  %v268_v17 = vunpack.c.l.b16 %v266_v14  ;;  %v1707_v14 = vmov 0 }
  0x1b   : > { %vm1031_vm6 = vcmp.ne.s32.totalorder %v302_v21, %v1026_v20  ;;  %vm1036_vm7 = vcmp.ne.s32.totalorder %v303_v23, %v1028_v22  ;;  %vm1041_vm8 = vcmp.ne.s32.totalorder %v295_v24, %v1026_v20  ;;  %vm1050_vm10 = vcmp.ne.s32.totalorder %v296_v26, %v1028_v22 }
  0x1c   : > { %v271_v18 = vpack.c.b16 %v269_v16, %v269_v16  ;;  %v270_v19 = vpack.c.b16 %v268_v17, %v268_v17  ;;  %v1709_v24 = vmov 0  ;;  %v1711_v26 = vmov 0 }
  0x20   : > { %441 = vrot.lane.b32.xlu1 %v318_v13, %s966_s24  ;;  %381 = vrot.lane.b32.xlu0 %v318_v13, %s967_s25 }
  0x21   : > { %411 = vrot.lane.b32.xlu2 %v294_v15, %s968_s26  ;;  %s224_s26 = scalar_lea.vmem %s1628_s5, %s931_s23 }
  0x28   : > { %274 = vrot.lane.b32.xlu1 %v271_v18, %s969_s27  ;;  %272 = vrot.lane.b32.xlu0 %v270_v19, %s969_s27 }
  0x29   : > { %319 = vrot.lane.b32.xlu2 %v317_v8, %s970_s28  ;;  %v1701_v8 = vmov 0 }
  0x30   : > { %349 = vrot.lane.b32.xlu1 %v293_v10, %s971_s29  ;;  %321 = vrot.lane.b32.xlu0 %v318_v13, %s970_s28  ;;  %v1705_v13 = vmov 0 }
  0x31   : > { %351 = vrot.lane.b32.xlu2 %v294_v15, %s971_s29 }
  0x73   : > { %v410_v52 = vpop.permute.xlu2 %409 }
  0x74   : > { %v415_v11 = vunpack.c.l.b16 %v410_v52  ;;  %v416_v12 = vunpack.c.h.b16 %v410_v52 }
  0x7b   : > { %v412_v59 = vpop.permute.xlu2 %411 }
  0x7c   : > { %v429_v15 = vunpack.c.l.b16 %v412_v59  ;;  %v430_v16 = vunpack.c.h.b16 %v412_v59 }
  0x83   : > { %v320_v19 = vpop.permute.xlu2 %319 }
  0x8a   : > { %v440_v30 = vpop.permute.xlu1 %439  ;;  %v380_v31 = vpop.permute.xlu0 %379 }
  0x8b   : > { %v445_v35 = vunpack.c.l.b16 %v440_v30  ;;  %v446_v36 = vunpack.c.h.b16 %v440_v30  ;;  %v385_v61 = vunpack.c.l.b16 %v380_v31  ;;  %v386_v62 = vunpack.c.h.b16 %v380_v31 }
  0x8d   : > { %vm1074_vm14 = vcmp.ne.s32.totalorder %v445_v35, %v1026_v20  ;;  %vm1079_vm15 = vcmp.ne.s32.totalorder %v446_v36, %v1028_v22  ;;  %v1717_v36 = vmov 0 }
  0x8e   : > { %v1686_v46 = vsel %vm1074_vm14, 4294967295, %v1685_v46  ;;  %v1688_v47 = vsel %vm1079_vm15, 4294967295, %v1687_v47  ;;  %vm1629_vm4 = vmpackc.low %vm1079_vm15, %vm1074_vm14  ;;  %vm1203_vm15 = vcmp.ne.s32.totalorder %v415_v11, %v1026_v20 }
  0x8f   : > { %v1710_v24 = vsel %vm1203_vm15, 4294967295, %v1709_v24 }
  0x92   : > { %v442_v32 = vpop.permute.xlu1 %441  ;;  %v382_v33 = vpop.permute.xlu0 %381 }
  0x93   : > { %v444_v34 = vsel %vm443_vm12, %v440_v30, %v442_v32  ;;  %v459_v37 = vunpack.c.l.b16 %v442_v32  ;;  %v460_v40 = vunpack.c.h.b16 %v442_v32  ;;  %v399_v63 = vunpack.c.l.b16 %v382_v33 }
  0x94   : > { %v452_v44 = vunpack.c.l.b16 %v444_v34  ;;  %v453_v45 = vunpack.c.h.b16 %v444_v34  ;;  %v400_v0 = vunpack.c.h.b16 %v382_v33  ;;  %v1713_v32 = vmov 0 }
  0x95   : > { %vm1084_vm0 = vcmp.ne.s32.totalorder %v459_v37, %v1026_v20  ;;  %vm1089_vm1 = vcmp.ne.s32.totalorder %v460_v40, %v1028_v22  ;;  %v1719_v37 = vmov 0  ;;  %v325_v40 = vunpack.c.l.b16 %v320_v19 }
  0x96   : > { %v1690_v48 = vsel %vm1084_vm0, 4294967295, %v1689_v48  ;;  %vm1094_vm2 = vcmp.ne.s32.totalorder %v452_v44, %v1026_v20  ;;  %vm1099_vm3 = vcmp.ne.s32.totalorder %v453_v45, %v1028_v22  ;;  %vm1631_vm5 = vmpackc.low %vm1089_vm1, %vm1084_vm0  ;;  %vm1160_vm11 = vcmp.ne.s32.totalorder %v400_v0, %v1028_v22 }
  0x97   : > { %v1694_v50 = vsel %vm1094_vm2, 4294967295, %v1693_v50  ;;  %v1696_v51 = vsel %vm1099_vm3, 4294967295, %v1695_v51  ;;  %vm1630_vm12 = vmpackc.low %vm1099_vm3, %vm1094_vm2  ;;  %v1704_v9 = vsel %vm1160_vm11, 4294967295, %v1703_v9  ;;  %v326_v44 = vunpack.c.h.b16 %v320_v19 }
  0x98   : > { %vm353_vm0 = vcmask 130048  }
  0x9a   : > { %v275_v38 = vpop.permute.xlu1 %274  ;;  %v273_v39 = vpop.permute.xlu0 %272 }
  0x9b   : > { %v1059_v41 = vsel %vm1632_vm13, %v275_v38, 0  ;;  %v1062_v42 = vsel %vm1632_vm13, %v273_v39, %v275_v38  ;;  %v1065_v43 = vsel %vm1632_vm13, 0, %v273_v39  ;;  %vm1148_vm13 = vcmp.ne.s32.totalorder %v386_v62, %v1028_v22 }
  0x9c   : > { %517 = vrot.lane.b32.xlu2 %v1059_v41, %s972_s30  ;;  %513 = vrot.lane.b32.xlu0 %v1065_v43, %s972_s30  ;;  %v468_v53 = vsel %vm1631_vm5, %v1059_v41, 0  ;;  %v466_v54 = vsel %vm1629_vm4, %v1065_v43, 0  ;;  %v467_v55 = vsel %vm1630_vm12, %v1062_v42, 0  ;;  %vm383_vm4 = vcmask 146432  }
  0x9d   : > { %515 = vrot.lane.b32.xlu1 %v1062_v42, %s972_s30  ;;  %v554_v56 = vrot.slane %v1059_v41, 2  ;;  %v552_v57 = vrot.slane %v1065_v43, 2  ;;  %v553_v58 = vrot.slane %v1062_v42, 2  ;;  %v384_v60 = vsel %vm383_vm4, %v380_v31, %v382_v33 }
  0x9e   : > { %vm413_vm12 = vcmask 261120   ;;  %v392_v1 = vunpack.c.l.b16 %v384_v60  ;;  %v393_v2 = vunpack.c.h.b16 %v384_v60  ;;  %vm1143_vm5 = vcmp.ne.s32.totalorder %v385_v61, %v1026_v20  ;;  %v352_v61 = vpop.permute.xlu2 %351 }
  0x9f   : > { %v1698_v3 = vsel %vm1143_vm5, 4294967295, %v1697_v3  ;;  %v1700_v4 = vsel %vm1148_vm13, 4294967295, %v1699_v4  ;;  %v473_v5 = vrot.slane %v1059_v41, 6  ;;  %v471_v6 = vrot.slane %v1065_v43, 6  ;;  %vm1639_vm2 = vmpackc.low %vm1148_vm13, %vm1143_vm5 }
  0xa0   : > { %v414_v7 = vsel %vm413_vm12, %v410_v52, %v412_v59  ;;  %vm1155_vm4 = vcmp.ne.s32.totalorder %v399_v63, %v1026_v20  ;;  %v472_v10 = vrot.slane %v1062_v42, 6  ;;  %vm1168_vm12 = vcmp.ne.s32.totalorder %v392_v1, %v1026_v20 }
  0xa1   : > { %v1702_v8 = vsel %vm1155_vm4, 4294967295, %v1701_v8  ;;  %v1706_v13 = vsel %vm1168_vm12, 4294967295, %v1705_v13  ;;  %vm1173_vm9 = vcmp.ne.s32.totalorder %v393_v2, %v1028_v22  ;;  %v422_v17 = vunpack.c.l.b16 %v414_v7  ;;  %vm1638_vm3 = vmpackc.low %vm1160_vm11, %vm1155_vm4 }
  0xa2   : > { %v1708_v14 = vsel %vm1173_vm9, 4294967295, %v1707_v14  ;;  %v423_v18 = vunpack.c.h.b16 %v414_v7  ;;  %v408_v21 = vsel %vm1638_vm3, %v1059_v41, 0  ;;  %v406_v23 = vsel %vm1639_vm2, %v1065_v43, 0  ;;  %vm1643_vm14 = vmpackc.low %vm1173_vm9, %vm1168_vm12  ;;  %v322_v30 = vpop.permute.xlu0 %321  ;;  %v350_v59 = vpop.permute.xlu1 %349 }
  0xa3   : > { %vm1208_vm4 = vcmp.ne.s32.totalorder %v416_v12, %v1028_v22  ;;  %vm323_vm3 = vcmask 15360   ;;  %v407_v31 = vsel %vm1643_vm14, %v1062_v42, 0  ;;  %vm1219_vm2 = vcmp.ne.s32.totalorder %v429_v15, %v1026_v20 }
  0xa4   : > { %571 = vrot.lane.b32.xlu2 %v468_v53, %s973_s6  ;;  %567 = vrot.lane.b32.xlu0 %v466_v54, %s973_s6  ;;  %v1712_v26 = vsel %vm1208_vm4, 4294967295, %v1711_v26  ;;  %v1714_v32 = vsel %vm1219_vm2, 4294967295, %v1713_v32  ;;  %vm1224_vm5 = vcmp.ne.s32.totalorder %v430_v16, %v1028_v22  ;;  %v527_v34 = vrot.slane %v408_v21, 6  ;;  %vm1648_vm14 = vmpackc.low %vm1208_vm4, %vm1203_vm15 }
  0xa5   : > { %569 = vrot.lane.b32.xlu1 %v467_v55, %s973_s6  ;;  %v525_v35 = vrot.slane %v406_v23, 6  ;;  %vm1229_vm13 = vcmp.ne.s32.totalorder %v422_v17, %v1026_v20  ;;  %vm1234_vm12 = vcmp.ne.s32.totalorder %v423_v18, %v1028_v22  ;;  %v324_v38 = vsel %vm323_vm3, %v320_v19, %v322_v30  ;;  %vm1647_vm9 = vmpackc.low %vm1224_vm5, %vm1219_vm2 }
  0xa6   : > { %v1718_v36 = vsel %vm1229_vm13, 4294967295, %v1717_v36  ;;  %v1720_v37 = vsel %vm1234_vm12, 4294967295, %v1719_v37  ;;  %v526_v39 = vrot.slane %v407_v31, 6  ;;  %v339_v45 = vunpack.c.l.b16 %v322_v30 }
  0xa7   : > { %v340_v52 = vunpack.c.h.b16 %v322_v30  ;;  %v332_v53 = vunpack.c.l.b16 %v324_v38  ;;  %v333_v54 = vunpack.c.h.b16 %v324_v38  ;;  %v438_v55 = vsel %vm1647_vm9, %v1059_v41, 0  ;;  %vm1725_vm9 = vmpackc.low %vm1234_vm12, %vm1229_vm13 }
  0xa8   : > { %vm1266_vm11 = vcmp.ne.s32.totalorder %v325_v40, %v1026_v20  ;;  %vm1271_vm3 = vcmp.ne.s32.totalorder %v326_v44, %v1028_v22  ;;  %v437_v60 = vsel %vm1725_vm9, %v1062_v42, 0  ;;  %v1726_v62 = vmov 0 }
  0xa9   : > { %vm1287_vm15 = vcmp.ne.s32.totalorder %v340_v52, %v1028_v22  ;;  %v542_v0 = vrot.slane %v438_v55, 4  ;;  %vm1292_vm4 = vcmp.ne.s32.totalorder %v332_v53, %v1026_v20  ;;  %v1730_v2 = vmov 0  ;;  %vm1654_vm13 = vmpackc.low %vm1271_vm3, %vm1266_vm11 }
  0xaa   : > { %v1731_v2 = vsel %vm1292_vm4, 4294967295, %v1730_v2  ;;  %vm1297_vm9 = vcmp.ne.s32.totalorder %v333_v54, %v1028_v22  ;;  %v541_v7 = vrot.slane %v437_v60, 4  ;;  %v370_v11 = vunpack.c.h.b16 %v352_v61 }
  0xab   : > { %v355_v12 = vunpack.c.l.b16 %v350_v59  ;;  %v356_v15 = vunpack.c.h.b16 %v350_v59  ;;  %v346_v18 = vsel %vm1654_vm13, %v1065_v43, 0  ;;  %v1734_v21 = vmov 0  ;;  %vm1738_vm13 = vmpackc.low %vm1297_vm9, %vm1292_vm4 }
  0xac   : > { %559 = vrot.lane.b32.xlu2 %v554_v56, %s974_s7  ;;  %555 = vrot.lane.b32.xlu0 %v552_v57, %s974_s7  ;;  %v436_v56 = vsel %vm1648_vm14, %v1065_v43, 0  ;;  %v1721_v57 = vmov 0  ;;  %vm1282_vm14 = vcmp.ne.s32.totalorder %v339_v45, %v1026_v20  ;;  %v347_v30 = vsel %vm1738_vm13, %v1062_v42, 0 }
  0xad   : > { %557 = vrot.lane.b32.xlu1 %v553_v58, %s974_s7  ;;  %v1722_v57 = vsel %vm1266_vm11, 4294967295, %v1721_v57  ;;  %v1723_v58 = vmov 0  ;;  %v1727_v62 = vsel %vm1282_vm14, 4294967295, %v1726_v62  ;;  %v540_v1 = vrot.slane %v436_v56, 4  ;;  %vm1656_vm12 = vmpackc.low %vm1287_vm15, %vm1282_vm14 }
  0xae   : > { %v1724_v58 = vsel %vm1271_vm3, 4294967295, %v1723_v58  ;;  %v348_v19 = vsel %vm1656_vm12, %v1059_v41, 0  ;;  %vm1345_vm11 = vcmp.ne.s32.totalorder %v355_v12, %v1026_v20  ;;  %v1739_v31 = vmov 0 }
  0xaf   : > { %v1740_v31 = vsel %vm1345_vm11, 4294967295, %v1739_v31  ;;  %vm1350_vm12 = vcmp.ne.s32.totalorder %v356_v15, %v1028_v22  ;;  %v488_v38 = vrot.slane %v348_v19, 4  ;;  %v1745_v40 = vmov 0  ;;  %v612_v19 = vld [vmem:[%s1625_s2] sm:$0xff] }
  0xb0   : > { %v487_v44 = vrot.slane %v347_v30, 4 }
  0xb4   : > { %478 = vrot.lane.b32.xlu2 %v473_v5, %s975_s8  ;;  %474 = vrot.lane.b32.xlu0 %v471_v6, %s975_s8  ;;  %v1732_v5 = vmov 0  ;;  %v354_v6 = vsel %vm353_vm0, %v350_v59, %v352_v61  ;;  %vm1334_vm0 = vcmp.ne.s32.totalorder %v370_v11, %v1028_v22 }
  0xb5   : > { %476 = vrot.lane.b32.xlu1 %v472_v10, %s975_s8  ;;  %v1733_v5 = vsel %vm1297_vm9, 4294967295, %v1732_v5  ;;  %v369_v10 = vunpack.c.l.b16 %v352_v61  ;;  %v362_v16 = vunpack.c.l.b16 %v354_v6  ;;  %v363_v17 = vunpack.c.h.b16 %v354_v6  ;;  %vm1661_vm9 = vmpackc.low %vm1350_vm12, %vm1345_vm11 }
  0xb6   : > { %vm588_vm11 = vcmask 1045504  }
  0xb7   : > { %vm1329_vm2 = vcmp.ne.s32.totalorder %v369_v10, %v1026_v20  ;;  %vm1355_vm3 = vcmp.ne.s32.totalorder %v362_v16, %v1026_v20  ;;  %vm1360_vm4 = vcmp.ne.s32.totalorder %v363_v17, %v1028_v22  ;;  %v376_v20 = vsel %vm1661_vm9, %v1065_v43, 0 }
  0xb8   : > { %v1735_v21 = vsel %vm1329_vm2, 4294967295, %v1734_v21  ;;  %v1746_v40 = vsel %vm1360_vm4, 4294967295, %v1745_v40  ;;  %vm1662_vm13 = vmpackc.low %vm1334_vm0, %vm1329_vm2  ;;  %v501_v52 = vrot.slane %v376_v20, 2  ;;  %vm1663_vm9 = vcmask 769024  }
  0xb9   : > { %vm1664_vm14 = vmpackc.low %vm1360_vm4, %vm1355_vm3  ;;  %v378_v22 = vsel %vm1662_vm13, %v1059_v41, 0  ;;  %vm1665_vm13 = vcmask 1041408   ;;  %vm583_vm4 = vcmask 1043456  }
  0xba   : > { %v377_v45 = vsel %vm1664_vm14, %v1062_v42, 0  ;;  %v503_v53 = vrot.slane %v378_v22, 2  ;;  %vm1672_vm14 = vcmask 908288  }
  0xbb   : > { %v502_v54 = vrot.slane %v377_v45, 2 }
  0xbc   : > { %532 = vrot.lane.b32.xlu2 %v527_v34, %s976_s9  ;;  %528 = vrot.lane.b32.xlu0 %v525_v35, %s976_s9  ;;  %v1741_v34 = vmov 0  ;;  %v486_v35 = vrot.slane %v346_v18, 4 }
  0xbd   : > { %530 = vrot.lane.b32.xlu1 %v526_v39, %s976_s9  ;;  %v1742_v34 = vsel %vm1350_vm12, 4294967295, %v1741_v34  ;;  %v1743_v39 = vmov 0  ;;  %vm1747_vm12 = vcmask 1041408  }
  0xbe   : > { %v1744_v39 = vsel %vm1355_vm3, 4294967295, %v1743_v39  ;;  %vm1673_vm3 = vcmask 777216   ;;  %vm1748_vm2 = vmmov %vm1747_vm12 }
  0xc4   : > { %547 = vrot.lane.b32.xlu2 %v542_v0, %s977_s10  ;;  %543 = vrot.lane.b32.xlu0 %v540_v1, %s977_s10 }
  0xc5   : > { %545 = vrot.lane.b32.xlu1 %v541_v7, %s977_s10 }
  0xcc   : > { %489 = vrot.lane.b32.xlu0 %v486_v35, %s978_s11  ;;  %493 = vrot.lane.b32.xlu2 %v488_v38, %s978_s11 }
  0xcd   : > { %491 = vrot.lane.b32.xlu1 %v487_v44, %s978_s11 }
  0xd4   : > { %504 = vrot.lane.b32.xlu0 %v501_v52, %s979_s12  ;;  %508 = vrot.lane.b32.xlu2 %v503_v53, %s979_s12 }
  0xd5   : > { %506 = vrot.lane.b32.xlu1 %v502_v54, %s979_s12 }
  0xdc   : > { %615 = vperm.xlu0 %955, %v612_v19  }
  0xf6   : > { %v518_v55 = vpop.permute.xlu2 %517 }
  0xfe   : > { %v572_v56 = vpop.permute.xlu2 %571 }
 0x106   : > { %v560_v60 = vpop.permute.xlu2 %559 }
 0x10e   : > { %v514_v41 = vpop.permute.xlu0 %513  ;;  %v479_v12 = vpop.permute.xlu2 %478 }
 0x10f   : > { %v516_v59 = vpop.permute.xlu1 %515 }
 0x110   : > { %v521_v45 = vsel %vm1672_vm14, %v516_v59, %v518_v55  ;;  %v520_v52 = vsel %vm1672_vm14, %v514_v41, %v516_v59  ;;  %vm1749_vm14 = vmpackc.low %vm1036_vm7, %vm1031_vm6 }
 0x116   : > { %v568_v61 = vpop.permute.xlu0 %567  ;;  %v533_v18 = vpop.permute.xlu2 %532 }
 0x117   : > { %v570_v0 = vpop.permute.xlu1 %569 }
 0x118   : > { %v574_v1 = vsel %vm1663_vm9, %v568_v61, %v570_v0  ;;  %v575_v6 = vsel %vm1663_vm9, %v570_v0, %v572_v56  ;;  %vm1671_vm9 = vcmask 900096  }
 0x119   : > { %v623_v7 = vsel %vm1665_vm13, %v574_v1, 0  ;;  %v626_v10 = vsel %vm1665_vm13, %v575_v6, 0  ;;  %vm1675_vm13 = vcmask 785408  }
 0x11a   : > { %633 = vmatpush.bf16.msra.mxu0 %v623_v7  ;;  %646 = vmatpush.bf16.msra.mxu1 %v626_v10 }
 0x11e   : > { %v556_v11 = vpop.permute.xlu0 %555  ;;  %v548_v38 = vpop.permute.xlu2 %547 }
 0x11f   : > { %v558_v15 = vpop.permute.xlu1 %557 }
 0x120   : > { %v563_v1 = vsel %vm1673_vm3, %v558_v15, %v560_v60  ;;  %v562_v6 = vsel %vm1673_vm3, %v556_v11, %v558_v15  ;;  %vm1750_vm3 = vmpackc.low %vm1050_vm10, %vm1041_vm8 }
 0x126   : > { %v475_v16 = vpop.permute.xlu0 %474  ;;  %v494_v10 = vpop.permute.xlu2 %493 }
 0x127   : > { %v477_v17 = vpop.permute.xlu1 %476 }
 0x12e   : > { %v529_v30 = vpop.permute.xlu0 %528 }
 0x12f   : > { %v531_v35 = vpop.permute.xlu1 %530 }
 0x130   : > { %v536_v44 = vsel %vm1671_vm9, %v531_v35, %v533_v18  ;;  %v535_v20 = vsel %vm1671_vm9, %v529_v30, %v531_v35  ;;  %vm1676_vm9 = vcmask 916480   ;;  %v310_v35 = vsel %vm1749_vm14, %v1062_v42, 0 }
 0x131   : > { %v600_v54 = vsel %vm1747_vm12, %v521_v45, %v536_v44  ;;  %v597_v56 = vsel %vm1748_vm2, %v520_v52, %v535_v20  ;;  %vm1674_vm2 = vcmask 1039360   ;;  %vm495_vm12 = vcmask 1031168   ;;  %v509_v44 = vpop.permute.xlu2 %508 }
 0x132   : > { %v482_v30 = vsel %vm1674_vm2, %v477_v17, %v479_v12  ;;  %v481_v60 = vsel %vm1674_vm2, %v475_v16, %v477_v17  ;;  %v309_v12 = vsel %vm1750_vm3, %v1065_v43, 0  ;;  %vm1751_vm2 = vcmask 1041408   ;;  %v611_v43 = vld [vmem:[%s1624_s1] sm:$0xf] }
 0x133   : > { %v582_v17 = vsel %vm1751_vm2, %v310_v35, %v482_v30  ;;  %vm618_vm14 = vcmask 293888   ;;  %vm1754_vm3 = vnez %v1690_v48 }
 0x136   : > { %v544_v22 = vpop.permute.xlu0 %543 }
 0x137   : > { %v546_v53 = vpop.permute.xlu1 %545 }
 0x138   : > { %v551_v61 = vsel %vm1675_vm13, %v546_v53, %v548_v38  ;;  %v550_v0 = vsel %vm1675_vm13, %v544_v22, %v546_v53  ;;  %vm1752_vm13 = vmmov %vm1751_vm2  ;;  %vm1756_vm2 = vnez %v1714_v32 }
 0x139   : > { %v602_v7 = vsel %vm583_vm4, %v597_v56, %v550_v0  ;;  %v604_v55 = vsel %vm583_vm4, %v600_v54, %v551_v61  ;;  %v579_v38 = vsel %vm1752_vm13, %v309_v12, %v481_v60  ;;  %vm1755_vm13 = vmpackc.low %vm1089_vm1, %vm1754_vm3  ;;  %vm1759_vm1 = vnez %v1727_v62 }
 0x13a   : > { %v606_v41 = vsel %vm588_vm11, %v602_v7, %v562_v6  ;;  %v609_v59 = vsel %vm588_vm11, %v604_v55, %v563_v1  ;;  %vm1760_vm3 = vmpackc.low %vm1287_vm15, %vm1759_vm1  ;;  %vm1764_vm15 = vnez %v1696_v51  ;;  %vm1768_vm1 = vnez %v1702_v8 }
 0x13b   : > { %634 = vmatpush.bf16.msra.mxu0 %v606_v41  ;;  %647 = vmatpush.bf16.msra.mxu1 %v609_v59 }
 0x13e   : > { %v490_v18 = vpop.permute.xlu0 %489 }
 0x13f   : > { %v492_v19 = vpop.permute.xlu1 %491 }
 0x140   : > { %v497_v11 = vsel %vm495_vm12, %v492_v19, %v494_v10  ;;  %v496_v15 = vsel %vm495_vm12, %v490_v18, %v492_v19 }
 0x141   : > { %v585_v42 = vsel %vm583_vm4, %v579_v38, %v496_v15  ;;  %v587_v52 = vsel %vm583_vm4, %v582_v17, %v497_v11 }
 0x146   : > { %v505_v16 = vpop.permute.xlu0 %504 }
 0x147   : > { %v507_v20 = vpop.permute.xlu1 %506 }
 0x148   : > { %v512_v22 = vsel %vm1676_vm9, %v507_v20, %v509_v44  ;;  %v511_v45 = vsel %vm1676_vm9, %v505_v16, %v507_v20 }
 0x149   : > { %v590_v53 = vsel %vm588_vm11, %v585_v42, %v511_v45  ;;  %v593_v54 = vsel %vm588_vm11, %v587_v52, %v512_v22  ;;  %vm1753_vm11 = vcmask 138240  }
 0x14a   : > { %635 = vmatpush.bf16.msra.mxu0 %v590_v53  ;;  %648 = vmatpush.bf16.msra.mxu1 %v593_v54  ;;  %vm1758_vm9 = vmmov %vm1753_vm11 }
 0x14d   : > { %924 = vmatmul.msk.bf16.vlgmr.msra.gmra.mxu0 %vm618_vm14, %v611_v43  ;;  %925 = vmatmul.msk.bf16.vlgmr.msra.gmra.mxu1 %vm618_vm14, %v611_v43  ;;  %vm1757_vm14 = vmpackc.low %vm1224_vm5, %vm1756_vm2  ;;  %vm1761_vm5 = vnez %v1688_v47  ;;  %vm1765_vm2 = vnez %v1694_v50 }
 0x14e   : > { %v616_v56 = vpop.permute.xlu0 %615 }
 0x1ca   : > { %v637_v61 = vpop.f32.mrf.mxu0  ;;  %v650_v0 = vpop.f32.mrf.mxu1 }
 0x1cb   : > { %v638_v1 = vadd.f32 %v637_v61, %v616_v56  ;;  %v651_v6 = vadd.f32 %v650_v0, %v616_v56 }
 0x1cd   : > { %v654_v7 = vmax.f32 %v638_v1, 0.0  ;;  %v655_v55 = vmax.f32 %v651_v6, 0.0 }
 0x1cf   : > { %v656_v41 = vpack.c.bf16 %v655_v55, %v654_v7 }
 0x1d1   : > { %v659_v59 = vunpack.c.h.b16 %v656_v41  ;;  %v658_v10 = vunpack.c.l.b16 %v656_v41 }
 0x1d2   : > { %v639_v18 = vpop.f32.mrf.mxu0  ;;  %v652_v19 = vpop.f32.mrf.mxu1 }
 0x1d3   : > { %v661_v30 = vpack.c.b16 %v659_v59, %v659_v59  ;;  %v660_v60 = vpack.c.b16 %v658_v10, %v658_v10 }
 0x1d5   : > { %664 = vrot.lane.b32.xlu2 %v661_v30, %s969_s27  ;;  %662 = vrot.lane.b32.xlu1 %v660_v60, %s969_s27 }
 0x22f   : > { %v665_v11 = vpop.permute.xlu2 %664 }
 0x230   : > { %v672_v15 = vsel %vm1753_vm11, %v665_v11, 0 }
 0x231   : > { %733 = vrot.lane.b32.xlu0 %v672_v15, %s972_s30  ;;  %v690_v35 = vsel %vm1755_vm13, %v672_v15, 0  ;;  %v687_v12 = vsel %vm1757_vm14, %v672_v15, 0  ;;  %v678_v48 = vsel %vm1760_vm3, %v672_v15, 0  ;;  %v695_v32 = vrot.slane %v672_v15, 4  ;;  %vm1766_vm14 = vmpackc.low %vm1764_vm15, %vm1765_vm2 }
 0x232   : > { %vm1773_vm15 = vnez %v1720_v37  ;;  %vm1774_vm2 = vnez %v1718_v36 }
 0x239   : > { %777 = vrot.lane.b32.xlu0 %v690_v35, %s973_s6 }
 0x241   : > { %758 = vrot.lane.b32.xlu0 %v687_v12, %s977_s10 }
 0x247   : > { %v663_v16 = vpop.permute.xlu1 %662 }
 0x248   : > { %v1465_v17 = vsel %vm1753_vm11, %v663_v16, %v665_v11  ;;  %v1468_v49 = vsel %vm1758_vm9, 0, %v663_v16  ;;  %vm1762_vm9 = vnez %v1686_v46  ;;  %vm1767_vm11 = vnez %v1704_v9  ;;  %v814_v11 = vld [vmem:[%s1627_s4] sm:$0xff] }
 0x249   : > { %711 = vrot.lane.b32.xlu0 %v678_v48, %s978_s11  ;;  %729 = vrot.lane.b32.xlu1 %v1468_v49, %s972_s30  ;;  %vm1763_vm13 = vmpackc.low %vm1761_vm5, %vm1762_vm9  ;;  %v689_v62 = vsel %vm1766_vm14, %v1465_v17, 0  ;;  %vm1770_vm5 = vnez %v1712_v26  ;;  %vm1771_vm9 = vnez %v1710_v24  ;;  %v693_v36 = vrot.slane %v1468_v49, 4 }
 0x24a   : > { %731 = vrot.lane.b32.xlu2 %v1465_v17, %s972_s30  ;;  %v688_v33 = vsel %vm1763_vm13, %v1468_v49, 0  ;;  %vm1769_vm3 = vmpackc.low %vm1767_vm11, %vm1768_vm1  ;;  %vm1776_vm11 = vnez %v1735_v21  ;;  %v694_v37 = vrot.slane %v1465_v17, 4 }
 0x24b   : > { %v684_v46 = vsel %vm1769_vm3, %v672_v15, 0  ;;  %vm1772_vm13 = vmpackc.low %vm1770_vm5, %vm1771_vm9  ;;  %vm1778_vm3 = vnez %v1724_v58  ;;  %vm1779_vm5 = vnez %v1722_v57 }
 0x24c   : > { %v742_v47 = vrot.slane %v684_v46, 4  ;;  %v685_v51 = vsel %vm1772_vm13, %v1468_v49, 0  ;;  %vm1775_vm14 = vmpackc.low %vm1773_vm15, %vm1774_vm2  ;;  %vm1781_vm13 = vnez %v1733_v5  ;;  %vm1782_vm15 = vnez %v1731_v2 }
 0x24d   : > { %v686_v50 = vsel %vm1775_vm14, %v1465_v17, 0  ;;  %vm1777_vm1 = vmpackc.low %vm1334_vm0, %vm1776_vm11  ;;  %vm1784_vm0 = vnez %v1700_v4  ;;  %vm1785_vm14 = vnez %v1698_v3 }
 0x24e   : > { %v681_v8 = vsel %vm1777_vm1, %v672_v15, 0  ;;  %vm1780_vm9 = vmpackc.low %vm1778_vm3, %vm1779_vm5  ;;  %vm1787_vm1 = vnez %v1708_v14  ;;  %vm1788_vm3 = vnez %v1706_v13 }
 0x24f   : > { %v720_v9 = vrot.slane %v681_v8, 4  ;;  %v676_v24 = vsel %vm1780_vm9, %v1468_v49, 0  ;;  %vm1783_vm2 = vmpackc.low %vm1781_vm13, %vm1782_vm15  ;;  %vm1790_vm9 = vnez %v1742_v34  ;;  %vm1791_vm13 = vnez %v1740_v31 }
 0x250   : > { %v677_v26 = vsel %vm1783_vm2, %v1465_v17, 0  ;;  %vm1786_vm11 = vmpackc.low %vm1784_vm0, %vm1785_vm14  ;;  %vm1793_vm2 = vnez %v1746_v40  ;;  %vm1794_vm0 = vnez %v1744_v39 }
 0x251   : > { %766 = vrot.lane.b32.xlu0 %v695_v32, %s974_s7  ;;  %773 = vrot.lane.b32.xlu1 %v688_v33, %s973_s6  ;;  %v682_v57 = vsel %vm1786_vm11, %v1468_v49, 0  ;;  %vm1789_vm5 = vmpackc.low %vm1787_vm1, %vm1788_vm3  ;;  %vm1796_vm11 = vcmask 769024   ;;  %vm1798_vm3 = vcmask 785408  }
 0x252   : > { %775 = vrot.lane.b32.xlu2 %v689_v62, %s973_s6  ;;  %v683_v58 = vsel %vm1789_vm5, %v1465_v17, 0  ;;  %v740_v63 = vrot.slane %v682_v57, 4  ;;  %vm1792_vm15 = vmpackc.low %vm1790_vm9, %vm1791_vm13  ;;  %vm1799_vm5 = vcmask 777216   ;;  %vm1800_vm9 = vcmask 908288  }
 0x253   : > { %v741_v2 = vrot.slane %v683_v58, 4  ;;  %v679_v3 = vsel %vm1792_vm15, %v1468_v49, 0  ;;  %vm1795_vm14 = vmpackc.low %vm1793_vm2, %vm1794_vm0  ;;  %vm1801_vm13 = vcmask 900096   ;;  %vm1802_vm15 = vcmask 916480  }
 0x254   : > { %v680_v4 = vsel %vm1795_vm14, %v1465_v17, 0  ;;  %v718_v13 = vrot.slane %v679_v3, 4  ;;  %vm1797_vm1 = vmmov %vm1796_vm11  ;;  %vm1805_vm14 = vcmask 1039360  }
 0x255   : > { %v719_v14 = vrot.slane %v680_v4, 4  ;;  %vm1803_vm2 = vmmov %vm1798_vm3 }
 0x256   : > { %vm1804_vm0 = vmmov %vm1799_vm5 }
 0x259   : > { %747 = vrot.lane.b32.xlu0 %v742_v47, %s976_s9  ;;  %754 = vrot.lane.b32.xlu1 %v685_v51, %s977_s10  ;;  %v813_v47 = vld [vmem:[%s1626_s3] sm:$0xf] }
 0x25a   : > { %756 = vrot.lane.b32.xlu2 %v686_v50, %s977_s10 }
 0x261   : > { %725 = vrot.lane.b32.xlu0 %v720_v9, %s979_s12  ;;  %707 = vrot.lane.b32.xlu1 %v676_v24, %s978_s11 }
 0x262   : > { %709 = vrot.lane.b32.xlu2 %v677_v26, %s978_s11 }
 0x269   : > { %700 = vrot.lane.b32.xlu0 %v695_v32, %s975_s8  ;;  %762 = vrot.lane.b32.xlu1 %v693_v36, %s974_s7 }
 0x26a   : > { %764 = vrot.lane.b32.xlu2 %v694_v37, %s974_s7 }
 0x271   : > { %743 = vrot.lane.b32.xlu1 %v740_v63, %s976_s9 }
 0x272   : > { %745 = vrot.lane.b32.xlu2 %v741_v2, %s976_s9 }
 0x279   : > { %721 = vrot.lane.b32.xlu1 %v718_v13, %s979_s12 }
 0x27a   : > { %723 = vrot.lane.b32.xlu2 %v719_v14, %s979_s12 }
 0x281   : > { %696 = vrot.lane.b32.xlu1 %v693_v36, %s975_s8 }
 0x282   : > { %698 = vrot.lane.b32.xlu2 %v694_v37, %s975_s8 }
 0x289   : > { %817 = vperm.xlu1 %956, %v814_v11  }
 0x2a3   : > { %v734_v5 = vpop.permute.xlu0 %733 }
 0x2a4   : > { %v732_v21 = vpop.permute.xlu2 %731 }
 0x2a5   : > { %v736_v7 = vsel %vm1800_vm9, %v732_v21, %v734_v5 }
 0x2ab   : > { %v778_v23 = vpop.permute.xlu0 %777 }
 0x2ac   : > { %v776_v31 = vpop.permute.xlu2 %775 }
 0x2ad   : > { %v780_v34 = vsel %vm1796_vm11, %v776_v31, %v778_v23  ;;  %vm1806_vm11 = vmpackc.low %vm1036_vm7, %vm1031_vm6 }
 0x2ae   : > { %v828_v39 = vsel %vm583_vm4, %v780_v34, 0  ;;  %v675_v62 = vsel %vm1806_vm11, %v1465_v17, 0  ;;  %vm1809_vm6 = vmmov %vm1802_vm15 }
 0x2af   : > { %846 = vmatpush.bf16.msra.mxu3 %v828_v39  ;;  %vm1810_vm7 = vmmov %vm1805_vm14 }
 0x2b3   : > { %v759_v40 = vpop.permute.xlu0 %758 }
 0x2b4   : > { %v757_v38 = vpop.permute.xlu2 %756 }
 0x2b5   : > { %v761_v54 = vsel %vm1798_vm3, %v757_v38, %v759_v40  ;;  %vm1807_vm3 = vmmov %vm1800_vm9 }
 0x2b6   : > { %vm1811_vm9 = vmpackc.low %vm1050_vm10, %vm1041_vm8 }
 0x2b7   : > { %v674_v37 = vsel %vm1811_vm9, %v1468_v49, 0 }
 0x2bb   : > { %v712_v44 = vpop.permute.xlu0 %711  ;;  %v730_v20 = vpop.permute.xlu1 %729 }
 0x2bc   : > { %v710_v22 = vpop.permute.xlu2 %709  ;;  %v735_v50 = vsel %vm1807_vm3, %v730_v20, %v732_v21 }
 0x2bd   : > { %v714_v19 = vsel %vm495_vm12, %v710_v22, %v712_v44 }
 0x2c3   : > { %v767_v45 = vpop.permute.xlu0 %766  ;;  %v774_v42 = vpop.permute.xlu1 %773 }
 0x2c4   : > { %v765_v52 = vpop.permute.xlu2 %764  ;;  %v779_v53 = vsel %vm1797_vm1, %v774_v42, %v776_v31  ;;  %vm820_vm1 = vcmask 588800  }
 0x2c5   : > { %v769_v43 = vsel %vm1799_vm5, %v765_v52, %v767_v45  ;;  %v825_v56 = vsel %vm583_vm4, %v779_v53, 0  ;;  %vm1808_vm5 = vmmov %vm1801_vm13 }
 0x2c6   : > { %833 = vmatpush.bf16.msra.mxu2 %v825_v56  ;;  %v811_v61 = vsel %vm583_vm4, %v761_v54, %v769_v43 }
 0x2c7   : > { %847 = vmatpush.bf16.msra.mxu3 %v811_v61 }
 0x2cb   : > { %v748_v0 = vpop.permute.xlu0 %747  ;;  %v755_v1 = vpop.permute.xlu1 %754 }
 0x2cc   : > { %v746_v6 = vpop.permute.xlu2 %745  ;;  %v760_v12 = vsel %vm1803_vm2, %v755_v1, %v757_v38 }
 0x2cd   : > { %v750_v55 = vsel %vm1801_vm13, %v746_v6, %v748_v0 }
 0x2ce   : > { %v803_v41 = vsel %vm583_vm4, %v736_v7, %v750_v55 }
 0x2cf   : > { %848 = vmatpush.bf16.msra.mxu3 %v803_v41 }
 0x2d3   : > { %v726_v59 = vpop.permute.xlu0 %725  ;;  %v708_v10 = vpop.permute.xlu1 %707 }
 0x2d4   : > { %v724_v18 = vpop.permute.xlu2 %723  ;;  %v713_v8 = vsel %vm495_vm12, %v708_v10, %v710_v22 }
 0x2d5   : > { %v728_v30 = vsel %vm1802_vm15, %v724_v18, %v726_v59 }
 0x2d6   : > { %v795_v60 = vsel %vm583_vm4, %v714_v19, %v728_v30 }
 0x2d7   : > { %849 = vmatpush.bf16.msra.mxu3 %v795_v60 }
 0x2db   : > { %v701_v15 = vpop.permute.xlu0 %700  ;;  %v763_v35 = vpop.permute.xlu1 %762 }
 0x2dc   : > { %v768_v16 = vsel %vm1804_vm0, %v763_v35, %v765_v52  ;;  %v699_v48 = vpop.permute.xlu2 %698 }
 0x2dd   : > { %v703_v32 = vsel %vm1805_vm14, %v699_v48, %v701_v15  ;;  %v807_v33 = vsel %vm583_vm4, %v760_v12, %v768_v16 }
 0x2de   : > { %834 = vmatpush.bf16.msra.mxu2 %v807_v33  ;;  %v787_v46 = vsel %vm583_vm4, %v675_v62, %v703_v32 }
 0x2df   : > { %850 = vmatpush.bf16.msra.mxu3 %v787_v46 }
 0x2e2   : > { %927 = vmatmul.msk.bf16.vlgmr.msra.gmra.mxu3 %vm820_vm1, %v813_v47 }
 0x2e3   : > { %v744_v51 = vpop.permute.xlu1 %743 }
 0x2e4   : > { %v749_v27 = vsel %vm1808_vm5, %v744_v51, %v746_v6 }
 0x2e5   : > { %v799_v25 = vsel %vm583_vm4, %v735_v50, %v749_v27 }
 0x2e6   : > { %835 = vmatpush.bf16.msra.mxu2 %v799_v25 }
 0x2eb   : > { %v722_v17 = vpop.permute.xlu1 %721 }
 0x2ec   : > { %v727_v9 = vsel %vm1809_vm6, %v722_v17, %v724_v18 }
 0x2ed   : > { %v791_v24 = vsel %vm583_vm4, %v713_v8, %v727_v9 }
 0x2ee   : > { %836 = vmatpush.bf16.msra.mxu2 %v791_v24 }
 0x2f3   : > { %v697_v26 = vpop.permute.xlu1 %696 }
 0x2f4   : > { %v702_v36 = vsel %vm1810_vm7, %v697_v26, %v699_v48 }
 0x2f5   : > { %v783_v57 = vsel %vm583_vm4, %v674_v37, %v702_v36 }
 0x2f6   : > { %837 = vmatpush.bf16.msra.mxu2 %v783_v57 }
 0x2f9   : > { %926 = vmatmul.msk.bf16.vlgmr.msra.gmra.mxu2 %vm820_vm1, %v813_v47 }
 0x2fb   : > { %v818_v58 = vpop.permute.xlu1 %817 }
 0x365   : > { %v852_v63 = vpop.f32.mrf.mxu3 }
 0x366   : > { %v853_v2 = vadd.f32 %v852_v63, %v818_v58 }
 0x368   : > { %v857_v3 = vmax.f32 %v853_v2, 0.0 }
 0x36a   : > { %859 = vst [vmem:[%s224_s26 + $0x8] sm:$0xff] %v857_v3 }
 0x36d   : > { %v854_v29 = vpop.f32.mrf.mxu3 }
 0x37c   : > { %v839_v4 = vpop.f32.mrf.mxu2 }
 0x37d   : > { %v840_v28 = vadd.f32 %v839_v4, %v818_v58 }
 0x37f   : > { %v856_v13 = vmax.f32 %v840_v28, 0.0 }
 0x381   : > { %858 = vst [vmem:[%s224_s26] sm:$0xff] %v856_v13 }
 0x384   : > { %v841_v49 = vpop.f32.mrf.mxu2 }
 0x385 PF: > { %s15_s18 = sadd.s32 1, %s963_s18  }
 0x386   : > { %p12_p4 = scmp.ge.s32.totalorder %s15_s18, 4  }
 0x388   :  { %14 = sbr.rel (!%p12_p4) target bundleno = 1 (0x1), region = 70 }

</bundles_post_ra>
